<compile_context>
chip_gen: v7x
topology: tpu7x:2x2x1
jax: 0.10.0
libtpu: 0.0.40
codegen_flags: <defaults>
</compile_context>

<pallas_src>
import functools

import jax
import jax.numpy as jnp
from jax.experimental import pallas as pl
from jax.experimental.pallas import tpu as pltpu

INPUT_DIM = 10
HIDDEN_DIM = 64
DEFAULT_TILE_B = 8192  # 4-8K rows amortizes per-step overhead; VMEM-safe on v7x at bf16.


def _mlp_kernel(x_ref, w1_ref, b1_ref, w2_ref, b2_ref, o_ref):
    # fc1 on the MXU (bf16 operands, f32 accumulation); bias + ReLU on the VPU in f32.
    x = x_ref[...]                                          # (tb, INPUT_DIM) bf16
    h = jnp.dot(x, w1_ref[...],
                preferred_element_type=jnp.float32)         # (tb, HIDDEN_DIM) f32
    h = jnp.maximum(h + b1_ref[...], 0.0)                   # ReLU, f32

    # fc2: output width is 1, so an MXU matmul would use 1/128 (or 1/256) of the
    # output columns. Use a VPU multiply + XLU lane reduction instead.
    out = jnp.sum(h * w2_ref[...], axis=-1, keepdims=True)  # (tb, 1) f32
    out = out + b2_ref[0, 0]                                # scalar bias from SMEM
    o_ref[...] = out.astype(o_ref.dtype)


def _round_up(n: int, m: int) -> int:
    return ((n + m - 1) // m) * m


@functools.partial(jax.jit, static_argnames=("tile_b",))
def simple_tft_forward(x, w1, b1, w2, b2, *, tile_b=DEFAULT_TILE_B):
    """SimpleTFT forward.

    x  : (B, INPUT_DIM) float32 (cast to bf16 for the MXU feed)
    w1 : (INPUT_DIM, HIDDEN_DIM)   (pre-transposed vs. PyTorch fc1.weight)
    b1 : (1, HIDDEN_DIM) float32
    w2 : (1, HIDDEN_DIM) float32   (same layout as PyTorch fc2.weight)
    b2 : (1, 1) float32
    returns (B, 1) float32
    """
    batch = x.shape[0]

    # bf16 feed for the MXU; accumulation stays f32 inside the kernel.
    # TODO(synk): callers that already hold x in bf16 should skip this cast upstream.
    x = x.astype(jnp.bfloat16)
    w1 = w1.astype(jnp.bfloat16)

    # Batch tile: multiple of 8 (sublane constraint), no bigger than needed.
    tb = min(tile_b, _round_up(batch, 8))
    grid = (pl.cdiv(batch, tb),)   # partial edge block handled by Pallas masking

    cost = pl.CostEstimate(
        flops=2 * batch * INPUT_DIM * HIDDEN_DIM + 3 * batch * HIDDEN_DIM,
        transcendentals=0,
        bytes_accessed=(batch * (INPUT_DIM * 2 + 4)                   # x bf16 in, out f32
                        + INPUT_DIM * HIDDEN_DIM * 2                  # w1 bf16
                        + 2 * HIDDEN_DIM * 4 + 4),                    # b1, w2, b2 f32
    )

    out = pl.pallas_call(
        _mlp_kernel,
        out_shape=jax.ShapeDtypeStruct((batch, 1), jnp.float32),
        grid=grid,
        in_specs=[
            # Streamed input: one batch tile per grid step (auto double-buffered).
            pl.BlockSpec((tb, INPUT_DIM), lambda i: (i, 0)),
            # Parameters: constant block index -> fetched once, VMEM-resident.
            pl.BlockSpec((INPUT_DIM, HIDDEN_DIM), lambda i: (0, 0)),
            pl.BlockSpec((1, HIDDEN_DIM), lambda i: (0, 0)),
            pl.BlockSpec((1, HIDDEN_DIM), lambda i: (0, 0)),
            # (1,1) fc2 bias as a scalar in SMEM.
            pl.BlockSpec(memory_space=pltpu.MemorySpace.SMEM),
        ],
        out_specs=pl.BlockSpec((tb, 1), lambda i: (i, 0)),
        compiler_params=pltpu.CompilerParams(
            dimension_semantics=("parallel",),   # batch rows are independent
            vmem_limit_bytes=32 * 1024 * 1024,   # double-buffered tiles fit; v7x-safe
        ),
        cost_estimate=cost,
    )(x, w1, b1, w2, b2)
    return out


def _ref_forward(x, w1, b1, w2, b2):
    # Reference with the same bf16 input feed / f32 accumulation as the kernel.
    h = jnp.dot(x.astype(jnp.bfloat16), w1.astype(jnp.bfloat16),
                preferred_element_type=jnp.float32)
    h = jnp.maximum(h + b1, 0.0)
    return h @ w2.T + b2


def init_params(key, input_dim=INPUT_DIM, hidden_dim=HIDDEN_DIM):
    """Deterministic parameter init (uniform, like PyTorch's default range)."""
    k1, k2, k3, k4 = jax.random.split(key, 4)
    bound1 = 1.0 / (input_dim ** 0.5)
    bound2 = 1.0 / (hidden_dim ** 0.5)
    w1 = jax.random.uniform(k1, (input_dim, hidden_dim), jnp.float32,
                            minval=-bound1, maxval=bound1)      # (in, hidden)
    b1 = jax.random.uniform(k2, (1, hidden_dim), jnp.float32,
                            minval=-bound1, maxval=bound1)
    w2 = jax.random.uniform(k3, (1, hidden_dim), jnp.float32,
                            minval=-bound2, maxval=bound2)      # PyTorch fc2.weight layout
    b2 = jax.random.uniform(k4, (1, 1), jnp.float32,
                            minval=-bound2, maxval=bound2)
    return w1, b1, w2, b2


if __name__ == "__main__":
    key = jax.random.PRNGKey(0)
    k_params, k_x1, k_x2 = jax.random.split(key, 3)
    w1, b1, w2, b2 = init_params(k_params)

    # Small smoke test (single tile).
    batch = 8
    x = jax.random.normal(k_x1, (batch, INPUT_DIM), jnp.float32)
    out = jax.block_until_ready(simple_tft_forward(x, w1, b1, w2, b2))
    ref = _ref_forward(x, w1, b1, w2, b2)
    assert out.shape == (batch, 1)
    assert jnp.allclose(out, ref, atol=2e-3, rtol=2e-3)

    # Multi-tile test with a ragged tail (exercises grid + partial edge-block masking).
    batch2 = 300
    x2 = jax.random.normal(k_x2, (batch2, INPUT_DIM), jnp.float32)
    out2 = jax.block_until_ready(simple_tft_forward(x2, w1, b1, w2, b2, tile_b=128))
    ref2 = _ref_forward(x2, w1, b1, w2, b2)
    assert out2.shape == (batch2, 1)
    assert jnp.allclose(out2, ref2, atol=2e-3, rtol=2e-3)

    print("KERNEL_OK")
</pallas_src>

<mosaic_0001>
module attributes {stable_mosaic.version = 11 : i64} {
  func.func @_mlp_kernel(%arg0: i32, %arg1: memref<8x10xbf16, #tpu.memory_space<vmem>>, %arg2: memref<10x64xbf16, #tpu.memory_space<vmem>>, %arg3: memref<1x64xf32, #tpu.memory_space<vmem>>, %arg4: memref<1x64xf32, #tpu.memory_space<vmem>>, %arg5: memref<1x1xf32, #tpu.memory_space<smem>>, %arg6: memref<8x1xf32, #tpu.memory_space<vmem>>) attributes {dimension_semantics = [#tpu.dimension_semantics<parallel>], iteration_bounds = array<i64: 1>, scalar_prefetch = 0 : i64, scratch_operands = 0 : i64, tpu.core_type = #tpu.core_type<tc>, window_params = [{transform_indices = @transform_0, window_bounds = array<i64: 8, 10>}, {pipeline_mode = #tpu.pipeline_mode<synchronous>, transform_indices = @transform_1, window_bounds = array<i64: 10, 64>}, {pipeline_mode = #tpu.pipeline_mode<synchronous>, transform_indices = @transform_2, window_bounds = array<i64: 1, 64>}, {pipeline_mode = #tpu.pipeline_mode<synchronous>, transform_indices = @transform_3, window_bounds = array<i64: 1, 64>}, {transform_indices = @transform_4, window_bounds = array<i64: 1, 1>}, {transform_indices = @transform_5, window_bounds = array<i64: 8, 1>}]} {
    %c0 = arith.constant 0 : index
    %c0_0 = arith.constant 0 : index
    %0 = vector.load %arg1[%c0, %c0_0] : memref<8x10xbf16, #tpu.memory_space<vmem>>, vector<8x10xbf16>
    %c0_1 = arith.constant 0 : index
    %c0_2 = arith.constant 0 : index
    %1 = vector.load %arg2[%c0_1, %c0_2] : memref<10x64xbf16, #tpu.memory_space<vmem>>, vector<10x64xbf16>
    %cst = arith.constant dense<0.000000e+00> : vector<8x64xf32>
    %2 = tpu.matmul %0, %1, %cst {dimension_numbers = #tpu.dot_dimension_numbers<[1], [0], [0], [1], [0, 0, 1, 1], [], []>} : vector<8x10xbf16>, vector<10x64xbf16>, vector<8x64xf32> -> vector<8x64xf32>
    %c0_3 = arith.constant 0 : index
    %c0_4 = arith.constant 0 : index
    %3 = vector.load %arg3[%c0_3, %c0_4] : memref<1x64xf32, #tpu.memory_space<vmem>>, vector<1x64xf32>
    %4 = vector.broadcast %3 : vector<1x64xf32> to vector<8x64xf32>
    %5 = arith.addf %2, %4 : vector<8x64xf32>
    %cst_5 = arith.constant 0.000000e+00 : f32
    %6 = vector.broadcast %cst_5 : f32 to vector<8x64xf32>
    %7 = arith.maximumf %5, %6 : vector<8x64xf32>
    %c0_6 = arith.constant 0 : index
    %c0_7 = arith.constant 0 : index
    %8 = vector.load %arg4[%c0_6, %c0_7] : memref<1x64xf32, #tpu.memory_space<vmem>>, vector<1x64xf32>
    %9 = vector.broadcast %8 : vector<1x64xf32> to vector<8x64xf32>
    %10 = arith.mulf %7, %9 : vector<8x64xf32>
    %cst_8 = arith.constant dense<0.000000e+00> : vector<8xf32>
    %11 = vector.multi_reduction <add>, %10, %cst_8 [1] : vector<8x64xf32> to vector<8xf32>
    %12 = vector.shape_cast %11 : vector<8xf32> to vector<8x1xf32>
    %c0_9 = arith.constant 0 : index
    %c0_10 = arith.constant 0 : index
    %13 = memref.load %arg5[%c0_9, %c0_10] : memref<1x1xf32, #tpu.memory_space<smem>>
    %14 = vector.broadcast %13 : f32 to vector<8x1xf32>
    %15 = arith.addf %12, %14 : vector<8x1xf32>
    %c0_11 = arith.constant 0 : index
    %c0_12 = arith.constant 0 : index
    %16 = vector.load %arg6[%c0_11, %c0_12] : memref<8x1xf32, #tpu.memory_space<vmem>>, vector<8x1xf32>
    tpu.vector_store %arg6[%c0_11, %c0_12], %15 {strides = array<i32>} : memref<8x1xf32, #tpu.memory_space<vmem>>, vector<8x1xf32>,
    return
  }
  func.func @transform_0(%arg0: i32) -> (i32, i32) {
    %c0_i32 = arith.constant 0 : i32
    %c0_i32_0 = arith.constant 0 : i32
    return %arg0, %c0_i32 : i32, i32
  }
  func.func @transform_1(%arg0: i32) -> (i32, i32) {
    %c0_i32 = arith.constant 0 : i32
    %c0_i32_0 = arith.constant 0 : i32
    %c0_i32_1 = arith.constant 0 : i32
    return %c0_i32, %c0_i32_0 : i32, i32
  }
  func.func @transform_2(%arg0: i32) -> (i32, i32) {
    %c0_i32 = arith.constant 0 : i32
    %c0_i32_0 = arith.constant 0 : i32
    %c0_i32_1 = arith.constant 0 : i32
    return %c0_i32, %c0_i32_0 : i32, i32
  }
  func.func @transform_3(%arg0: i32) -> (i32, i32) {
    %c0_i32 = arith.constant 0 : i32
    %c0_i32_0 = arith.constant 0 : i32
    %c0_i32_1 = arith.constant 0 : i32
    return %c0_i32, %c0_i32_0 : i32, i32
  }
  func.func @transform_4(%arg0: i32) -> (i32, i32) {
    %c0_i32 = arith.constant 0 : i32
    %c0_i32_0 = arith.constant 0 : i32
    %c0_i32_1 = arith.constant 0 : i32
    return %c0_i32, %c0_i32_0 : i32, i32
  }
  func.func @transform_5(%arg0: i32) -> (i32, i32) {
    %c0_i32 = arith.constant 0 : i32
    %c0_i32_0 = arith.constant 0 : i32
    return %arg0, %c0_i32 : i32, i32
  }
}

</mosaic_0001>

<bundles_post_ra>
// kernel: simple_tft_forward.1
= control target key start
LH: loop header
LB: loop body
LE: loop exit
PB: predicated region body
PF: predicated region fallthrough
CT: control target
= control target key end

     0   :  { %vm41_vm0 = vcmask 1044480   ;;  %v122_v0 = vmov 0.0   ;;  %vm123_vm1 = vmmov 0   ;;  %vm37_vm2 = vcmask 80896   ;;  %s172_s1 = inlined_call_operand.vmem [shape: bf16[10,64], index: 1, kind: input, shape index: {}]   ;;  %s173_s0 = inlined_call_operand.vmem [shape: bf16[8,10], index: 0, kind: input, shape index: {}]   ;;  %s174_s2 = inlined_call_operand.vmem [shape: f32[1,64], index: 2, kind: input, shape index: {}]   ;;  %s175_s3 = inlined_call_operand.vmem [shape: f32[1,64], index: 3, kind: input, shape index: {}]   ;;  %s176_s4 = inlined_call_operand.<no memory space> [shape: f32[1,1], index: 4, kind: input, shape index: {}]   ;;  %s177_s5 = inlined_call_operand.vmem [shape: f32[8,1], index: 5, kind: output, shape index: {}]  }
   0x1   :  { %113 = vmatprep.subr.bf16.mxu0 %v122_v0  ;;  %v121_v1 = vld [vmem:[%s172_s1] sm:$0x1f]   ;;  %115 = vmatprep.mubr.msk.bf16.mxu0 %vm123_vm1, %v122_v0  ;;  %vm94_vm3 = vcmask 523264   ;;  %v99_v14 = vstv %s176_s4  ;;  %vm101_vm4 = vcmask 7168  }
   0x2   :  { %v43_v2 = vsel %vm41_vm0, %v121_v1, 0  ;;  %v22_v3 = vld [vmem:[%s173_s0] sm:$0xf] }
   0x3   :  { %114 = vmatpush3.bf16.msra.mxu0 %v43_v2  ;;  %v107_v4 = vld [vmem:[%s174_s2] ss:$0 sm:$0xff] }
   0x4   :  { %v110_v9 = vld [vmem:[%s175_s3] ss:$0 sm:$0xff] }
   0x6   :  { %116 = vmatmul.mubr.msk.bf16.vlgmr.msra.gmra.mrb[0].mxu0 %vm37_vm2, %v22_v3 }
  0xd9   :  { %v79_v5 = vpop.f32.mrb[0].mxu0 }
  0xda   :  { %v80_v6 = vadd.f32 %v107_v4, %v79_v5  ;;  %v117_v7 = vpop.f32.mrb[1].mxu0 }
  0xdb   :  { %v82_v8 = vpop.f32.mrb[2].mxu0 }
  0xdc   :  { %v85_v10 = vmax.f32 %v80_v6, 0.0  ;;  %v118_v11 = vpop.f32.mrb[3].mxu0 }
  0xde   :  { %v93_v12 = vmul.f32 %v110_v9, %v85_v10 }
  0xe0   :  { %v95_v13 = vsel %vm94_vm3, %v93_v12, 0.0 }
  0xe1   :  { %96 = vadd.xlane.f32.xlu0 %v95_v13 }
 0x16e   :  { %v97_v15 = vpop.xlane.xlu0 %96 }
 0x16f   :  { %v100_v16 = vadd.f32 %v99_v14, %v97_v15 }
 0x171   :  { %102 = vst.msk [vmem:[%s177_s5] sm:$0xff] %vm101_vm4, %v100_v16 }

</bundles_post_ra>
